<compile_context>
chip_gen: v5e
topology: v5e:2x2
jax: 0.10.0
libtpu: 0.0.40
codegen_flags: <defaults>
</compile_context>

<pallas_src>
import functools
import jax
import jax.numpy as jnp
from jax.experimental import pallas as pl
from jax.experimental.pallas import tpu as pltpu

LN_EPS = 1e-5
_MASK_VALUE = -1e30


def _layer_norm(x, gamma, beta):
    # x: (rows, D) f32; gamma/beta: (1, D) f32
    mu = jnp.mean(x, axis=-1, keepdims=True)
    xc = x - mu
    var = jnp.mean(xc * xc, axis=-1, keepdims=True)
    inv = jax.lax.rsqrt(var + LN_EPS)
    return xc * inv * gamma + beta


def resblock_kernel(n_head, seq_valid, mlp_chunk,
                    x_ref,
                    ln1_w_ref, ln1_b_ref,
                    wqkv_ref, bqkv_ref,
                    wo_ref, bo_ref,
                    ln2_w_ref, ln2_b_ref,
                    wfc_ref, bfc_ref,
                    wproj_ref, bproj_ref,
                    out_ref,
                    oheads_ref):
    xb = x_ref[...].astype(jnp.float32)          # (Bt, Lp, D)
    Bt, Lp, D = xb.shape
    H = n_head
    dh = D // H
    rows = Bt * Lp
    x = xb.reshape(rows, D)

    # ---- self-attention branch -------------------------------------------
    h1 = _layer_norm(x, ln1_w_ref[...], ln1_b_ref[...])          # (rows, D) f32
    # fused QKV projection: bf16 operands, f32 MXU accumulate.
    # 1/sqrt(dh) is pre-folded into the q columns of wqkv / bqkv.
    # Cast to bf16 once so the longest-lived activation is half-width.
    qkv = (jnp.dot(h1.astype(jnp.bfloat16), wqkv_ref[...],
                   preferred_element_type=jnp.float32)
           + bqkv_ref[...]).astype(jnp.bfloat16)                 # (rows, 3D)

    # additive key-padding bias (compile-time constant, only if L was padded)
    if seq_valid < Lp:
        col = jax.lax.broadcasted_iota(jnp.int32, (1, 1, Lp), 2)
        key_bias = jnp.where(col < seq_valid, 0.0, _MASK_VALUE).astype(jnp.float32)
    else:
        key_bias = None

    for h in range(H):                                    # static small loop
        qs = slice(0 * D + h * dh, 0 * D + (h + 1) * dh)
        ks = slice(1 * D + h * dh, 1 * D + (h + 1) * dh)
        vs = slice(2 * D + h * dh, 2 * D + (h + 1) * dh)
        qh = qkv[:, qs].reshape(Bt, Lp, dh)
        kh = qkv[:, ks].reshape(Bt, Lp, dh)
        vh = qkv[:, vs].reshape(Bt, Lp, dh)

        s = jnp.einsum('bld,bmd->blm', qh, kh,
                       preferred_element_type=jnp.float32)        # (Bt, Lp, Lp)
        if key_bias is not None:
            s = s + key_bias
        s = s - jnp.max(s, axis=-1, keepdims=True)
        e = jnp.exp(s)
        p = e * pl.reciprocal(jnp.sum(e, axis=-1, keepdims=True), approx=True)
        o = jnp.einsum('blm,bmd->bld', p.astype(jnp.bfloat16), vh,
                       preferred_element_type=jnp.float32)        # (Bt, Lp, dh)

        # static lane-offset store into the head-output scratch -- replaces
        # both the lane-dim concat and the per-head k=dh output-proj dots.
        oheads_ref[:, pl.ds(h * dh, dh)] = o.reshape(rows, dh).astype(jnp.bfloat16)

    # one fused full-k output projection: (rows, D) x (D, D)
    attn = jnp.dot(oheads_ref[...], wo_ref[...],
                   preferred_element_type=jnp.float32) + bo_ref[...]

    x1 = x + attn

    # ---- MLP branch (hidden dim tiled in chunks of `mlp_chunk`) -------------
    h2 = _layer_norm(x1, ln2_w_ref[...], ln2_b_ref[...]).astype(jnp.bfloat16)
    mlp = jnp.zeros((rows, D), jnp.float32)
    for c in range(0, 4 * D, mlp_chunk):
        fc = jnp.dot(h2, wfc_ref[:, pl.ds(c, mlp_chunk)],
                     preferred_element_type=jnp.float32)
        fc = fc + bfc_ref[:, pl.ds(c, mlp_chunk)]
        fc = fc * jax.nn.sigmoid(1.702 * fc)                      # QuickGELU (f32)
        mlp = mlp + jnp.dot(fc.astype(jnp.bfloat16),
                            wproj_ref[pl.ds(c, mlp_chunk), :],
                            preferred_element_type=jnp.float32)
    mlp = mlp + bproj_ref[...]

    out_ref[...] = (x1 + mlp).reshape(Bt, Lp, D).astype(out_ref.dtype)


def _tpu_config():
    """Per-generation sizing: VMEM limit, megacore requirement, row target."""
    cap = None
    try:
        info = pltpu.get_tpu_info()
        cap = int(getattr(info, "vmem_capacity_bytes", 0)) or None
    except Exception:
        cap = None
    if cap is None:
        cap = 64 * 1024 * 1024            # conservative (smallest per-core VMEM)
    two_tc = cap <= 64 * 1024 * 1024      # v7x-like: 64 MiB per TC, 2 TCs/chip
    vmem_limit = int(cap * 3 // 4)        # ~48 MiB on v7x, ~96 MiB on v5e/v6e
    target_rows = 256 if two_tc else 512
    return vmem_limit, two_tc, target_rows


def _pick_batch_block(B, L, target_rows, require_two_steps):
    """Largest batch block Bt dividing B; >=2 grid steps only when the chip
    actually has 2 TensorCores (v7x-like)."""
    if B <= 1:
        return 1
    best = 1
    for bt in range(1, B + 1):
        if B % bt:
            continue
        if require_two_steps and B // bt < 2:
            continue
        if bt * L > max(target_rows, L):
            continue
        best = bt
    return best


def resblock_pallas(x_bld, params, n_head, seq_valid, vmem_limit, two_tc,
                    target_rows):
    """x_bld: (B, Lp, D) float32 (Lp padded to a multiple of 8)."""
    B, Lp, D = x_bld.shape
    Bt = _pick_batch_block(B, Lp, target_rows, require_two_steps=two_tc)
    assert B % Bt == 0
    mlp_chunk = D if D >= 256 else 4 * D          # tile 4*D hidden at real widths

    # Constant-across-grid operands: single-buffered (halves weight residency).
    const = lambda shape: pl.BlockSpec(shape, lambda b: (0,) * len(shape),
                                       pipeline_mode=pl.Buffered(1))
    in_specs = [
        pl.BlockSpec((Bt, Lp, D), lambda b: (b, 0, 0)),   # x
        const((1, D)), const((1, D)),                     # ln1 w/b
        const((D, 3 * D)), const((1, 3 * D)),             # in_proj (pre-T, scaled q)
        const((D, D)), const((1, D)),                     # out_proj (pre-T) / b
        const((1, D)), const((1, D)),                     # ln2 w/b
        const((D, 4 * D)), const((1, 4 * D)),             # mlp.c_fc (pre-T) / b
        const((4 * D, D)), const((1, D)),                 # mlp.c_proj (pre-T) / b
    ]
    out_spec = pl.BlockSpec((Bt, Lp, D), lambda b: (b, 0, 0))

    return pl.pallas_call(
        functools.partial(resblock_kernel, n_head, seq_valid, mlp_chunk),
        out_shape=jax.ShapeDtypeStruct((B, Lp, D), x_bld.dtype),
        grid=(B // Bt,),
        in_specs=in_specs,
        out_specs=out_spec,
        scratch_shapes=[pltpu.VMEM((Bt * Lp, D), jnp.bfloat16)],   # head outputs
        compiler_params=pltpu.CompilerParams(
            dimension_semantics=("parallel",),
            vmem_limit_bytes=vmem_limit),
    )(x_bld,
      params["ln1_w"], params["ln1_b"],
      params["wqkv"], params["bqkv"],
      params["wo"], params["bo"],
      params["ln2_w"], params["ln2_b"],
      params["wfc"], params["bfc"],
      params["wproj"], params["bproj"])


def init_transformer_params(key, width, layers):
    """PyTorch-layout parameters (in_proj_weight (3D,D), out_proj (D,D), ...)."""
    D = width
    params = []
    for _ in range(layers):
        keys = jax.random.split(key, 7)
        key = keys[0]
        p = {
            "ln1_w": jnp.ones((1, D), jnp.float32),
            "ln1_b": jnp.zeros((1, D), jnp.float32),
            "wqkv": 0.02 * jax.random.normal(keys[1], (3 * D, D), jnp.float32),
            "bqkv": 0.01 * jax.random.normal(keys[2], (1, 3 * D), jnp.float32),
            "wo": 0.02 * jax.random.normal(keys[3], (D, D), jnp.float32),
            "bo": jnp.zeros((1, D), jnp.float32),
            "ln2_w": jnp.ones((1, D), jnp.float32),
            "ln2_b": jnp.zeros((1, D), jnp.float32),
            "wfc": 0.02 * jax.random.normal(keys[4], (4 * D, D), jnp.float32),
            "bfc": 0.01 * jax.random.normal(keys[5], (1, 4 * D), jnp.float32),
            "wproj": 0.02 * jax.random.normal(keys[6], (D, 4 * D), jnp.float32),
            "bproj": jnp.zeros((1, D), jnp.float32),
        }
        params.append(p)
    return params


def prepare_kernel_params(torch_params, n_head):
    """One-time conversion to the kernel layout: pre-transposed bf16 weights
    and 1/sqrt(dh) folded into the q projection."""
    prepped = []
    for p in torch_params:
        D = p["ln1_w"].shape[-1]
        dh = D // n_head
        scale = 1.0 / (dh ** 0.5)
        sv = jnp.concatenate([jnp.full((D,), scale, jnp.float32),
                              jnp.ones((2 * D,), jnp.float32)])
        wqkv_t = p["wqkv"].T * sv[None, :]                 # (D, 3D), q cols scaled
        bqkv = p["bqkv"] * sv[None, :]                     # (1, 3D)
        prepped.append({
            "ln1_w": p["ln1_w"], "ln1_b": p["ln1_b"],
            "wqkv": wqkv_t.astype(jnp.bfloat16), "bqkv": bqkv,
            "wo": p["wo"].T.astype(jnp.bfloat16), "bo": p["bo"],     # (D, D)
            "ln2_w": p["ln2_w"], "ln2_b": p["ln2_b"],
            "wfc": p["wfc"].T.astype(jnp.bfloat16), "bfc": p["bfc"],
            "wproj": p["wproj"].T.astype(jnp.bfloat16), "bproj": p["bproj"],
        })
    return prepped


@functools.partial(jax.jit, static_argnames=("n_head",))
def transformer_forward(x_lbd, params, n_head):
    # x_lbd: (L, B, D) -- PyTorch MultiheadAttention layout (seq, batch, d_model)
    L, B, D = x_lbd.shape
    x = jnp.transpose(x_lbd, (1, 0, 2))      # -> (B, L, D), once per forward
    Lp = ((L + 7) // 8) * 8                  # sublane-align the sequence dim
    if Lp != L:
        x = jnp.pad(x, ((0, 0), (0, Lp - L), (0, 0)))
    vmem_limit, two_tc, target_rows = _tpu_config()
    for p in params:
        x = resblock_pallas(x, p, n_head, L, vmem_limit, two_tc, target_rows)
    if Lp != L:
        x = x[:, :L, :]
    return jnp.transpose(x, (1, 0, 2))       # back to (L, B, D)


if __name__ == "__main__":
    width, layers, heads = 32, 2, 4
    seq_len, batch = 8, 2

    key = jax.random.PRNGKey(0)
    kx, kp = jax.random.split(key)
    x = jax.random.normal(kx, (seq_len, batch, width), jnp.float32)
    torch_params = init_transformer_params(kp, width, layers)
    params = prepare_kernel_params(torch_params, heads)

    out = transformer_forward(x, params, heads)
    out = jax.block_until_ready(out)
    assert out.shape == (seq_len, batch, width)
    assert bool(jnp.all(jnp.isfinite(out)))
    print("KERNEL_OK")
</pallas_src>

<mosaic_0001>
module attributes {stable_mosaic.version = 11 : i64} {
  func.func @resblock_kernel(%arg0: i32, %arg1: memref<1x8x32xf32, #tpu.memory_space<vmem>>, %arg2: memref<1x32xf32, #tpu.memory_space<vmem>>, %arg3: memref<1x32xf32, #tpu.memory_space<vmem>>, %arg4: memref<32x96xbf16, #tpu.memory_space<vmem>>, %arg5: memref<1x96xf32, #tpu.memory_space<vmem>>, %arg6: memref<32x32xbf16, #tpu.memory_space<vmem>>, %arg7: memref<1x32xf32, #tpu.memory_space<vmem>>, %arg8: memref<1x32xf32, #tpu.memory_space<vmem>>, %arg9: memref<1x32xf32, #tpu.memory_space<vmem>>, %arg10: memref<32x128xbf16, #tpu.memory_space<vmem>>, %arg11: memref<1x128xf32, #tpu.memory_space<vmem>>, %arg12: memref<128x32xbf16, #tpu.memory_space<vmem>>, %arg13: memref<1x32xf32, #tpu.memory_space<vmem>>, %arg14: memref<1x8x32xf32, #tpu.memory_space<vmem>>, %arg15: memref<8x32xbf16, #tpu.memory_space<vmem>>) attributes {dimension_semantics = [#tpu.dimension_semantics<parallel>], iteration_bounds = array<i64: 2>, scalar_prefetch = 0 : i64, scratch_operands = 1 : i64, tpu.core_type = #tpu.core_type<tc>, window_params = [{transform_indices = @transform_0, window_bounds = array<i64: 1, 8, 32>}, {pipeline_mode = #tpu.pipeline_mode<synchronous>, transform_indices = @transform_1, window_bounds = array<i64: 1, 32>}, {pipeline_mode = #tpu.pipeline_mode<synchronous>, transform_indices = @transform_2, window_bounds = array<i64: 1, 32>}, {pipeline_mode = #tpu.pipeline_mode<synchronous>, transform_indices = @transform_3, window_bounds = array<i64: 32, 96>}, {pipeline_mode = #tpu.pipeline_mode<synchronous>, transform_indices = @transform_4, window_bounds = array<i64: 1, 96>}, {pipeline_mode = #tpu.pipeline_mode<synchronous>, transform_indices = @transform_5, window_bounds = array<i64: 32, 32>}, {pipeline_mode = #tpu.pipeline_mode<synchronous>, transform_indices = @transform_6, window_bounds = array<i64: 1, 32>}, {pipeline_mode = #tpu.pipeline_mode<synchronous>, transform_indices = @transform_7, window_bounds = array<i64: 1, 32>}, {pipeline_mode = #tpu.pipeline_mode<synchronous>, transform_indices = @transform_8, window_bounds = array<i64: 1, 32>}, {pipeline_mode = #tpu.pipeline_mode<synchronous>, transform_indices = @transform_9, window_bounds = array<i64: 32, 128>}, {pipeline_mode = #tpu.pipeline_mode<synchronous>, transform_indices = @transform_10, window_bounds = array<i64: 1, 128>}, {pipeline_mode = #tpu.pipeline_mode<synchronous>, transform_indices = @transform_11, window_bounds = array<i64: 128, 32>}, {pipeline_mode = #tpu.pipeline_mode<synchronous>, transform_indices = @transform_12, window_bounds = array<i64: 1, 32>}, {transform_indices = @transform_13, window_bounds = array<i64: 1, 8, 32>}]} {
    %c0 = arith.constant 0 : index
    %c0_0 = arith.constant 0 : index
    %c0_1 = arith.constant 0 : index
    %0 = vector.load %arg1[%c0, %c0_0, %c0_1] : memref<1x8x32xf32, #tpu.memory_space<vmem>>, vector<1x8x32xf32>
    %1 = vector.shape_cast %0 : vector<1x8x32xf32> to vector<8x32xf32>
    %c0_2 = arith.constant 0 : index
    %c0_3 = arith.constant 0 : index
    %2 = vector.load %arg2[%c0_2, %c0_3] : memref<1x32xf32, #tpu.memory_space<vmem>>, vector<1x32xf32>
    %c0_4 = arith.constant 0 : index
    %c0_5 = arith.constant 0 : index
    %3 = vector.load %arg3[%c0_4, %c0_5] : memref<1x32xf32, #tpu.memory_space<vmem>>, vector<1x32xf32>
    %cst = arith.constant dense<0.000000e+00> : vector<8xf32>
    %4 = vector.multi_reduction <add>, %1, %cst [1] : vector<8x32xf32> to vector<8xf32>
    %5 = vector.shape_cast %4 : vector<8xf32> to vector<8x1xf32>
    %cst_6 = arith.constant 3.200000e+01 : f32
    %6 = vector.broadcast %cst_6 : f32 to vector<8x1xf32>
    %7 = arith.divf %5, %6 : vector<8x1xf32>
    %8 = vector.broadcast %7 : vector<8x1xf32> to vector<8x32xf32>
    %9 = arith.subf %1, %8 : vector<8x32xf32>
    %10 = arith.mulf %9, %9 : vector<8x32xf32>
    %cst_7 = arith.constant dense<0.000000e+00> : vector<8xf32>
    %11 = vector.multi_reduction <add>, %10, %cst_7 [1] : vector<8x32xf32> to vector<8xf32>
    %12 = vector.shape_cast %11 : vector<8xf32> to vector<8x1xf32>
    %cst_8 = arith.constant 3.200000e+01 : f32
    %13 = vector.broadcast %cst_8 : f32 to vector<8x1xf32>
    %14 = arith.divf %12, %13 : vector<8x1xf32>
    %cst_9 = arith.constant 9.99999974E-6 : f32
    %15 = vector.broadcast %cst_9 : f32 to vector<8x1xf32>
    %16 = arith.addf %14, %15 : vector<8x1xf32>
    %17 = math.rsqrt %16 : vector<8x1xf32>
    %18 = vector.broadcast %17 : vector<8x1xf32> to vector<8x32xf32>
    %19 = arith.mulf %9, %18 : vector<8x32xf32>
    %20 = vector.broadcast %2 : vector<1x32xf32> to vector<8x32xf32>
    %21 = arith.mulf %19, %20 : vector<8x32xf32>
    %22 = vector.broadcast %3 : vector<1x32xf32> to vector<8x32xf32>
    %23 = arith.addf %21, %22 : vector<8x32xf32>
    %24 = arith.truncf %23 : vector<8x32xf32> to vector<8x32xbf16>
    %c0_10 = arith.constant 0 : index
    %c0_11 = arith.constant 0 : index
    %25 = vector.load %arg4[%c0_10, %c0_11] : memref<32x96xbf16, #tpu.memory_space<vmem>>, vector<32x96xbf16>
    %cst_12 = arith.constant dense<0.000000e+00> : vector<8x96xf32>
    %26 = tpu.matmul %24, %25, %cst_12 {dimension_numbers = #tpu.dot_dimension_numbers<[1], [0], [0], [1], [0, 0, 1, 1], [], []>} : vector<8x32xbf16>, vector<32x96xbf16>, vector<8x96xf32> -> vector<8x96xf32>
    %c0_13 = arith.constant 0 : index
    %c0_14 = arith.constant 0 : index
    %27 = vector.load %arg5[%c0_13, %c0_14] : memref<1x96xf32, #tpu.memory_space<vmem>>, vector<1x96xf32>
    %28 = vector.broadcast %27 : vector<1x96xf32> to vector<8x96xf32>
    %29 = arith.addf %26, %28 : vector<8x96xf32>
    %30 = arith.truncf %29 : vector<8x96xf32> to vector<8x96xbf16>
    %31 = vector.extract_strided_slice %30 {offsets = [0, 0], sizes = [8, 8], strides = [1, 1]} : vector<8x96xbf16> to vector<8x8xbf16>
    %32 = vector.shape_cast %31 : vector<8x8xbf16> to vector<1x8x8xbf16>
    %33 = vector.extract_strided_slice %30 {offsets = [0, 32], sizes = [8, 8], strides = [1, 1]} : vector<8x96xbf16> to vector<8x8xbf16>
    %34 = vector.shape_cast %33 : vector<8x8xbf16> to vector<1x8x8xbf16>
    %35 = vector.extract_strided_slice %30 {offsets = [0, 64], sizes = [8, 8], strides = [1, 1]} : vector<8x96xbf16> to vector<8x8xbf16>
    %36 = vector.shape_cast %35 : vector<8x8xbf16> to vector<1x8x8xbf16>
    "tpu.trace_start"() <{level = 10 : i32, message = "bld,bmd->blm"}> : () -> ()
    %cst_15 = arith.constant dense<0.000000e+00> : vector<1x8x8xf32>
    %37 = tpu.matmul %32, %34, %cst_15 {dimension_numbers = #tpu.dot_dimension_numbers<[2], [2], [1], [1], [0, 0, 0, 1, 1, 1], [0], [0]>} : vector<1x8x8xbf16>, vector<1x8x8xbf16>, vector<1x8x8xf32> -> vector<1x8x8xf32>
    "tpu.trace_stop"() : () -> ()
    %cst_16 = arith.constant dense<0xFF800000> : vector<1x8xf32>
    %38 = vector.multi_reduction <maximumf>, %37, %cst_16 [2] : vector<1x8x8xf32> to vector<1x8xf32>
    %39 = vector.shape_cast %38 : vector<1x8xf32> to vector<1x8x1xf32>
    %40 = vector.broadcast %39 : vector<1x8x1xf32> to vector<1x8x8xf32>
    %41 = arith.subf %37, %40 : vector<1x8x8xf32>
    %42 = math.exp %41 : vector<1x8x8xf32>
    %cst_17 = arith.constant dense<0.000000e+00> : vector<1x8xf32>
    %43 = vector.multi_reduction <add>, %42, %cst_17 [2] : vector<1x8x8xf32> to vector<1x8xf32>
    %44 = vector.shape_cast %43 : vector<1x8xf32> to vector<1x8x1xf32>
    %45 = tpu.reciprocal %44 {approx = true} : vector<1x8x1xf32> -> vector<1x8x1xf32>
    %46 = vector.broadcast %45 : vector<1x8x1xf32> to vector<1x8x8xf32>
    %47 = arith.mulf %42, %46 : vector<1x8x8xf32>
    %48 = arith.truncf %47 : vector<1x8x8xf32> to vector<1x8x8xbf16>
    "tpu.trace_start"() <{level = 10 : i32, message = "blm,bmd->bld"}> : () -> ()
    %cst_18 = arith.constant dense<0.000000e+00> : vector<1x8x8xf32>
    %49 = tpu.matmul %48, %36, %cst_18 {dimension_numbers = #tpu.dot_dimension_numbers<[2], [1], [1], [2], [0, 0, 0, 1, 1, 2], [0], [0]>} : vector<1x8x8xbf16>, vector<1x8x8xbf16>, vector<1x8x8xf32> -> vector<1x8x8xf32>
    "tpu.trace_stop"() : () -> ()
    %50 = vector.shape_cast %49 : vector<1x8x8xf32> to vector<8x8xf32>
    %51 = arith.truncf %50 : vector<8x8xf32> to vector<8x8xbf16>
    %c0_19 = arith.constant 0 : index
    %c0_20 = arith.constant 0 : index
    %52 = vector.load %arg15[%c0_19, %c0_20] : memref<8x32xbf16, #tpu.memory_space<vmem>>, vector<8x8xbf16>
    tpu.vector_store %arg15[%c0_19, %c0_20], %51 {strides = array<i32>} : memref<8x32xbf16, #tpu.memory_space<vmem>>, vector<8x8xbf16>,
    %53 = vector.extract_strided_slice %30 {offsets = [0, 8], sizes = [8, 8], strides = [1, 1]} : vector<8x96xbf16> to vector<8x8xbf16>
    %54 = vector.shape_cast %53 : vector<8x8xbf16> to vector<1x8x8xbf16>
    %55 = vector.extract_strided_slice %30 {offsets = [0, 40], sizes = [8, 8], strides = [1, 1]} : vector<8x96xbf16> to vector<8x8xbf16>
    %56 = vector.shape_cast %55 : vector<8x8xbf16> to vector<1x8x8xbf16>
    %57 = vector.extract_strided_slice %30 {offsets = [0, 72], sizes = [8, 8], strides = [1, 1]} : vector<8x96xbf16> to vector<8x8xbf16>
    %58 = vector.shape_cast %57 : vector<8x8xbf16> to vector<1x8x8xbf16>
    "tpu.trace_start"() <{level = 10 : i32, message = "bld,bmd->blm"}> : () -> ()
    %cst_21 = arith.constant dense<0.000000e+00> : vector<1x8x8xf32>
    %59 = tpu.matmul %54, %56, %cst_21 {dimension_numbers = #tpu.dot_dimension_numbers<[2], [2], [1], [1], [0, 0, 0, 1, 1, 1], [0], [0]>} : vector<1x8x8xbf16>, vector<1x8x8xbf16>, vector<1x8x8xf32> -> vector<1x8x8xf32>
    "tpu.trace_stop"() : () -> ()
    %cst_22 = arith.constant dense<0xFF800000> : vector<1x8xf32>
    %60 = vector.multi_reduction <maximumf>, %59, %cst_22 [2] : vector<1x8x8xf32> to vector<1x8xf32>
    %61 = vector.shape_cast %60 : vector<1x8xf32> to vector<1x8x1xf32>
    %62 = vector.broadcast %61 : vector<1x8x1xf32> to vector<1x8x8xf32>
    %63 = arith.subf %59, %62 : vector<1x8x8xf32>
    %64 = math.exp %63 : vector<1x8x8xf32>
    %cst_23 = arith.constant dense<0.000000e+00> : vector<1x8xf32>
    %65 = vector.multi_reduction <add>, %64, %cst_23 [2] : vector<1x8x8xf32> to vector<1x8xf32>
    %66 = vector.shape_cast %65 : vector<1x8xf32> to vector<1x8x1xf32>
    %67 = tpu.reciprocal %66 {approx = true} : vector<1x8x1xf32> -> vector<1x8x1xf32>
    %68 = vector.broadcast %67 : vector<1x8x1xf32> to vector<1x8x8xf32>
    %69 = arith.mulf %64, %68 : vector<1x8x8xf32>
    %70 = arith.truncf %69 : vector<1x8x8xf32> to vector<1x8x8xbf16>
    "tpu.trace_start"() <{level = 10 : i32, message = "blm,bmd->bld"}> : () -> ()
    %cst_24 = arith.constant dense<0.000000e+00> : vector<1x8x8xf32>
    %71 = tpu.matmul %70, %58, %cst_24 {dimension_numbers = #tpu.dot_dimension_numbers<[2], [1], [1], [2], [0, 0, 0, 1, 1, 2], [0], [0]>} : vector<1x8x8xbf16>, vector<1x8x8xbf16>, vector<1x8x8xf32> -> vector<1x8x8xf32>
    "tpu.trace_stop"() : () -> ()
    %72 = vector.shape_cast %71 : vector<1x8x8xf32> to vector<8x8xf32>
    %73 = arith.truncf %72 : vector<8x8xf32> to vector<8x8xbf16>
    %c0_25 = arith.constant 0 : index
    %c8 = arith.constant 8 : index
    %74 = vector.load %arg15[%c0_25, %c8] : memref<8x32xbf16, #tpu.memory_space<vmem>>, vector<8x8xbf16>
    tpu.vector_store %arg15[%c0_25, %c8], %73 {strides = array<i32>} : memref<8x32xbf16, #tpu.memory_space<vmem>>, vector<8x8xbf16>,
    %75 = vector.extract_strided_slice %30 {offsets = [0, 16], sizes = [8, 8], strides = [1, 1]} : vector<8x96xbf16> to vector<8x8xbf16>
    %76 = vector.shape_cast %75 : vector<8x8xbf16> to vector<1x8x8xbf16>
    %77 = vector.extract_strided_slice %30 {offsets = [0, 48], sizes = [8, 8], strides = [1, 1]} : vector<8x96xbf16> to vector<8x8xbf16>
    %78 = vector.shape_cast %77 : vector<8x8xbf16> to vector<1x8x8xbf16>
    %79 = vector.extract_strided_slice %30 {offsets = [0, 80], sizes = [8, 8], strides = [1, 1]} : vector<8x96xbf16> to vector<8x8xbf16>
    %80 = vector.shape_cast %79 : vector<8x8xbf16> to vector<1x8x8xbf16>
    "tpu.trace_start"() <{level = 10 : i32, message = "bld,bmd->blm"}> : () -> ()
    %cst_26 = arith.constant dense<0.000000e+00> : vector<1x8x8xf32>
    %81 = tpu.matmul %76, %78, %cst_26 {dimension_numbers = #tpu.dot_dimension_numbers<[2], [2], [1], [1], [0, 0, 0, 1, 1, 1], [0], [0]>} : vector<1x8x8xbf16>, vector<1x8x8xbf16>, vector<1x8x8xf32> -> vector<1x8x8xf32>
    "tpu.trace_stop"() : () -> ()
    %cst_27 = arith.constant dense<0xFF800000> : vector<1x8xf32>
    %82 = vector.multi_reduction <maximumf>, %81, %cst_27 [2] : vector<1x8x8xf32> to vector<1x8xf32>
    %83 = vector.shape_cast %82 : vector<1x8xf32> to vector<1x8x1xf32>
    %84 = vector.broadcast %83 : vector<1x8x1xf32> to vector<1x8x8xf32>
    %85 = arith.subf %81, %84 : vector<1x8x8xf32>
    %86 = math.exp %85 : vector<1x8x8xf32>
    %cst_28 = arith.constant dense<0.000000e+00> : vector<1x8xf32>
    %87 = vector.multi_reduction <add>, %86, %cst_28 [2] : vector<1x8x8xf32> to vector<1x8xf32>
    %88 = vector.shape_cast %87 : vector<1x8xf32> to vector<1x8x1xf32>
    %89 = tpu.reciprocal %88 {approx = true} : vector<1x8x1xf32> -> vector<1x8x1xf32>
    %90 = vector.broadcast %89 : vector<1x8x1xf32> to vector<1x8x8xf32>
    %91 = arith.mulf %86, %90 : vector<1x8x8xf32>
    %92 = arith.truncf %91 : vector<1x8x8xf32> to vector<1x8x8xbf16>
    "tpu.trace_start"() <{level = 10 : i32, message = "blm,bmd->bld"}> : () -> ()
    %cst_29 = arith.constant dense<0.000000e+00> : vector<1x8x8xf32>
    %93 = tpu.matmul %92, %80, %cst_29 {dimension_numbers = #tpu.dot_dimension_numbers<[2], [1], [1], [2], [0, 0, 0, 1, 1, 2], [0], [0]>} : vector<1x8x8xbf16>, vector<1x8x8xbf16>, vector<1x8x8xf32> -> vector<1x8x8xf32>
    "tpu.trace_stop"() : () -> ()
    %94 = vector.shape_cast %93 : vector<1x8x8xf32> to vector<8x8xf32>
    %95 = arith.truncf %94 : vector<8x8xf32> to vector<8x8xbf16>
    %c0_30 = arith.constant 0 : index
    %c16 = arith.constant 16 : index
    %96 = vector.load %arg15[%c0_30, %c16] : memref<8x32xbf16, #tpu.memory_space<vmem>>, vector<8x8xbf16>
    tpu.vector_store %arg15[%c0_30, %c16], %95 {strides = array<i32>} : memref<8x32xbf16, #tpu.memory_space<vmem>>, vector<8x8xbf16>,
    %97 = vector.extract_strided_slice %30 {offsets = [0, 24], sizes = [8, 8], strides = [1, 1]} : vector<8x96xbf16> to vector<8x8xbf16>
    %98 = vector.shape_cast %97 : vector<8x8xbf16> to vector<1x8x8xbf16>
    %99 = vector.extract_strided_slice %30 {offsets = [0, 56], sizes = [8, 8], strides = [1, 1]} : vector<8x96xbf16> to vector<8x8xbf16>
    %100 = vector.shape_cast %99 : vector<8x8xbf16> to vector<1x8x8xbf16>
    %101 = vector.extract_strided_slice %30 {offsets = [0, 88], sizes = [8, 8], strides = [1, 1]} : vector<8x96xbf16> to vector<8x8xbf16>
    %102 = vector.shape_cast %101 : vector<8x8xbf16> to vector<1x8x8xbf16>
    "tpu.trace_start"() <{level = 10 : i32, message = "bld,bmd->blm"}> : () -> ()
    %cst_31 = arith.constant dense<0.000000e+00> : vector<1x8x8xf32>
    %103 = tpu.matmul %98, %100, %cst_31 {dimension_numbers = #tpu.dot_dimension_numbers<[2], [2], [1], [1], [0, 0, 0, 1, 1, 1], [0], [0]>} : vector<1x8x8xbf16>, vector<1x8x8xbf16>, vector<1x8x8xf32> -> vector<1x8x8xf32>
    "tpu.trace_stop"() : () -> ()
    %cst_32 = arith.constant dense<0xFF800000> : vector<1x8xf32>
    %104 = vector.multi_reduction <maximumf>, %103, %cst_32 [2] : vector<1x8x8xf32> to vector<1x8xf32>
    %105 = vector.shape_cast %104 : vector<1x8xf32> to vector<1x8x1xf32>
    %106 = vector.broadcast %105 : vector<1x8x1xf32> to vector<1x8x8xf32>
    %107 = arith.subf %103, %106 : vector<1x8x8xf32>
    %108 = math.exp %107 : vector<1x8x8xf32>
    %cst_33 = arith.constant dense<0.000000e+00> : vector<1x8xf32>
    %109 = vector.multi_reduction <add>, %108, %cst_33 [2] : vector<1x8x8xf32> to vector<1x8xf32>
    %110 = vector.shape_cast %109 : vector<1x8xf32> to vector<1x8x1xf32>
    %111 = tpu.reciprocal %110 {approx = true} : vector<1x8x1xf32> -> vector<1x8x1xf32>
    %112 = vector.broadcast %111 : vector<1x8x1xf32> to vector<1x8x8xf32>
    %113 = arith.mulf %108, %112 : vector<1x8x8xf32>
    %114 = arith.truncf %113 : vector<1x8x8xf32> to vector<1x8x8xbf16>
    "tpu.trace_start"() <{level = 10 : i32, message = "blm,bmd->bld"}> : () -> ()
    %cst_34 = arith.constant dense<0.000000e+00> : vector<1x8x8xf32>
    %115 = tpu.matmul %114, %102, %cst_34 {dimension_numbers = #tpu.dot_dimension_numbers<[2], [1], [1], [2], [0, 0, 0, 1, 1, 2], [0], [0]>} : vector<1x8x8xbf16>, vector<1x8x8xbf16>, vector<1x8x8xf32> -> vector<1x8x8xf32>
    "tpu.trace_stop"() : () -> ()
    %116 = vector.shape_cast %115 : vector<1x8x8xf32> to vector<8x8xf32>
    %117 = arith.truncf %116 : vector<8x8xf32> to vector<8x8xbf16>
    %c0_35 = arith.constant 0 : index
    %c24 = arith.constant 24 : index
    %118 = vector.load %arg15[%c0_35, %c24] : memref<8x32xbf16, #tpu.memory_space<vmem>>, vector<8x8xbf16>
    tpu.vector_store %arg15[%c0_35, %c24], %117 {strides = array<i32>} : memref<8x32xbf16, #tpu.memory_space<vmem>>, vector<8x8xbf16>,
    %c0_36 = arith.constant 0 : index
    %c0_37 = arith.constant 0 : index
    %119 = vector.load %arg15[%c0_36, %c0_37] : memref<8x32xbf16, #tpu.memory_space<vmem>>, vector<8x32xbf16>
    %c0_38 = arith.constant 0 : index
    %c0_39 = arith.constant 0 : index
    %120 = vector.load %arg6[%c0_38, %c0_39] : memref<32x32xbf16, #tpu.memory_space<vmem>>, vector<32x32xbf16>
    %cst_40 = arith.constant dense<0.000000e+00> : vector<8x32xf32>
    %121 = tpu.matmul %119, %120, %cst_40 {dimension_numbers = #tpu.dot_dimension_numbers<[1], [0], [0], [1], [0, 0, 1, 1], [], []>} : vector<8x32xbf16>, vector<32x32xbf16>, vector<8x32xf32> -> vector<8x32xf32>
    %c0_41 = arith.constant 0 : index
    %c0_42 = arith.constant 0 : index
    %122 = vector.load %arg7[%c0_41, %c0_42] : memref<1x32xf32, #tpu.memory_space<vmem>>, vector<1x32xf32>
    %123 = vector.broadcast %122 : vector<1x32xf32> to vector<8x32xf32>
    %124 = arith.addf %121, %123 : vector<8x32xf32>
    %125 = arith.addf %1, %124 : vector<8x32xf32>
    %c0_43 = arith.constant 0 : index
    %c0_44 = arith.constant 0 : index
    %126 = vector.load %arg8[%c0_43, %c0_44] : memref<1x32xf32, #tpu.memory_space<vmem>>, vector<1x32xf32>
    %c0_45 = arith.constant 0 : index
    %c0_46 = arith.constant 0 : index
    %127 = vector.load %arg9[%c0_45, %c0_46] : memref<1x32xf32, #tpu.memory_space<vmem>>, vector<1x32xf32>
    %cst_47 = arith.constant dense<0.000000e+00> : vector<8xf32>
    %128 = vector.multi_reduction <add>, %125, %cst_47 [1] : vector<8x32xf32> to vector<8xf32>
    %129 = vector.shape_cast %128 : vector<8xf32> to vector<8x1xf32>
    %cst_48 = arith.constant 3.200000e+01 : f32
    %130 = vector.broadcast %cst_48 : f32 to vector<8x1xf32>
    %131 = arith.divf %129, %130 : vector<8x1xf32>
    %132 = vector.broadcast %131 : vector<8x1xf32> to vector<8x32xf32>
    %133 = arith.subf %125, %132 : vector<8x32xf32>
    %134 = arith.mulf %133, %133 : vector<8x32xf32>
    %cst_49 = arith.constant dense<0.000000e+00> : vector<8xf32>
    %135 = vector.multi_reduction <add>, %134, %cst_49 [1] : vector<8x32xf32> to vector<8xf32>
    %136 = vector.shape_cast %135 : vector<8xf32> to vector<8x1xf32>
    %cst_50 = arith.constant 3.200000e+01 : f32
    %137 = vector.broadcast %cst_50 : f32 to vector<8x1xf32>
    %138 = arith.divf %136, %137 : vector<8x1xf32>
    %cst_51 = arith.constant 9.99999974E-6 : f32
    %139 = vector.broadcast %cst_51 : f32 to vector<8x1xf32>
    %140 = arith.addf %138, %139 : vector<8x1xf32>
    %141 = math.rsqrt %140 : vector<8x1xf32>
    %142 = vector.broadcast %141 : vector<8x1xf32> to vector<8x32xf32>
    %143 = arith.mulf %133, %142 : vector<8x32xf32>
    %144 = vector.broadcast %126 : vector<1x32xf32> to vector<8x32xf32>
    %145 = arith.mulf %143, %144 : vector<8x32xf32>
    %146 = vector.broadcast %127 : vector<1x32xf32> to vector<8x32xf32>
    %147 = arith.addf %145, %146 : vector<8x32xf32>
    %148 = arith.truncf %147 : vector<8x32xf32> to vector<8x32xbf16>
    %cst_52 = arith.constant 0.000000e+00 : f32
    %149 = vector.broadcast %cst_52 : f32 to vector<8x32xf32>
    %c0_53 = arith.constant 0 : index
    %c0_54 = arith.constant 0 : index
    %150 = vector.load %arg10[%c0_53, %c0_54] : memref<32x128xbf16, #tpu.memory_space<vmem>>, vector<32x128xbf16>
    %cst_55 = arith.constant dense<0.000000e+00> : vector<8x128xf32>
    %151 = tpu.matmul %148, %150, %cst_55 {dimension_numbers = #tpu.dot_dimension_numbers<[1], [0], [0], [1], [0, 0, 1, 1], [], []>} : vector<8x32xbf16>, vector<32x128xbf16>, vector<8x128xf32> -> vector<8x128xf32>
    %c0_56 = arith.constant 0 : index
    %c0_57 = arith.constant 0 : index
    %152 = vector.load %arg11[%c0_56, %c0_57] : memref<1x128xf32, #tpu.memory_space<vmem>>, vector<1x128xf32>
    %153 = vector.broadcast %152 : vector<1x128xf32> to vector<8x128xf32>
    %154 = arith.addf %151, %153 : vector<8x128xf32>
    %cst_58 = arith.constant 1.702000e+00 : f32
    %155 = vector.broadcast %cst_58 : f32 to vector<8x128xf32>
    %156 = arith.mulf %155, %154 : vector<8x128xf32>
    %157 = arith.negf %156 : vector<8x128xf32>
    %158 = math.exp %157 : vector<8x128xf32>
    %cst_59 = arith.constant 1.000000e+00 : f32
    %159 = vector.broadcast %cst_59 : f32 to vector<8x128xf32>
    %160 = arith.addf %159, %158 : vector<8x128xf32>
    %161 = arith.divf %159, %160 : vector<8x128xf32>
    %162 = arith.mulf %154, %161 : vector<8x128xf32>
    %163 = arith.truncf %162 : vector<8x128xf32> to vector<8x128xbf16>
    %c0_60 = arith.constant 0 : index
    %c0_61 = arith.constant 0 : index
    %164 = vector.load %arg12[%c0_60, %c0_61] : memref<128x32xbf16, #tpu.memory_space<vmem>>, vector<128x32xbf16>
    %cst_62 = arith.constant dense<0.000000e+00> : vector<8x32xf32>
    %165 = tpu.matmul %163, %164, %cst_62 {dimension_numbers = #tpu.dot_dimension_numbers<[1], [0], [0], [1], [0, 0, 1, 1], [], []>} : vector<8x128xbf16>, vector<128x32xbf16>, vector<8x32xf32> -> vector<8x32xf32>
    %166 = arith.addf %149, %165 : vector<8x32xf32>
    %c0_63 = arith.constant 0 : index
    %c0_64 = arith.constant 0 : index
    %167 = vector.load %arg13[%c0_63, %c0_64] : memref<1x32xf32, #tpu.memory_space<vmem>>, vector<1x32xf32>
    %168 = vector.broadcast %167 : vector<1x32xf32> to vector<8x32xf32>
    %169 = arith.addf %166, %168 : vector<8x32xf32>
    %170 = arith.addf %125, %169 : vector<8x32xf32>
    %171 = vector.shape_cast %170 : vector<8x32xf32> to vector<1x8x32xf32>
    %c0_65 = arith.constant 0 : index
    %c0_66 = arith.constant 0 : index
    %c0_67 = arith.constant 0 : index
    %172 = vector.load %arg14[%c0_65, %c0_66, %c0_67] : memref<1x8x32xf32, #tpu.memory_space<vmem>>, vector<1x8x32xf32>
    tpu.vector_store %arg14[%c0_65, %c0_66, %c0_67], %171 {strides = array<i32>} : memref<1x8x32xf32, #tpu.memory_space<vmem>>, vector<1x8x32xf32>,
    return
  }
  func.func @transform_0(%arg0: i32) -> (i32, i32, i32) {
    %c0_i32 = arith.constant 0 : i32
    %c0_i32_0 = arith.constant 0 : i32
    %c0_i32_1 = arith.constant 0 : i32
    return %arg0, %c0_i32, %c0_i32_0 : i32, i32, i32
  }
  func.func @transform_1(%arg0: i32) -> (i32, i32) {
    %c0_i32 = arith.constant 0 : i32
    %c0_i32_0 = arith.constant 0 : i32
    %c0_i32_1 = arith.constant 0 : i32
    return %c0_i32, %c0_i32_0 : i32, i32
  }
  func.func @transform_2(%arg0: i32) -> (i32, i32) {
    %c0_i32 = arith.constant 0 : i32
    %c0_i32_0 = arith.constant 0 : i32
    %c0_i32_1 = arith.constant 0 : i32
    return %c0_i32, %c0_i32_0 : i32, i32
  }
  func.func @transform_3(%arg0: i32) -> (i32, i32) {
    %c0_i32 = arith.constant 0 : i32
    %c0_i32_0 = arith.constant 0 : i32
    %c0_i32_1 = arith.constant 0 : i32
    return %c0_i32, %c0_i32_0 : i32, i32
  }
  func.func @transform_4(%arg0: i32) -> (i32, i32) {
    %c0_i32 = arith.constant 0 : i32
    %c0_i32_0 = arith.constant 0 : i32
    %c0_i32_1 = arith.constant 0 : i32
    return %c0_i32, %c0_i32_0 : i32, i32
  }
  func.func @transform_5(%arg0: i32) -> (i32, i32) {
    %c0_i32 = arith.constant 0 : i32
    %c0_i32_0 = arith.constant 0 : i32
    %c0_i32_1 = arith.constant 0 : i32
    return %c0_i32, %c0_i32_0 : i32, i32
  }
  func.func @transform_6(%arg0: i32) -> (i32, i32) {
    %c0_i32 = arith.constant 0 : i32
    %c0_i32_0 = arith.constant 0 : i32
    %c0_i32_1 = arith.constant 0 : i32
    return %c0_i32, %c0_i32_0 : i32, i32
  }
  func.func @transform_7(%arg0: i32) -> (i32, i32) {
    %c0_i32 = arith.constant 0 : i32
    %c0_i32_0 = arith.constant 0 : i32
    %c0_i32_1 = arith.constant 0 : i32
    return %c0_i32, %c0_i32_0 : i32, i32
  }
  func.func @transform_8(%arg0: i32) -> (i32, i32) {
    %c0_i32 = arith.constant 0 : i32
    %c0_i32_0 = arith.constant 0 : i32
    %c0_i32_1 = arith.constant 0 : i32
    return %c0_i32, %c0_i32_0 : i32, i32
  }
  func.func @transform_9(%arg0: i32) -> (i32, i32) {
    %c0_i32 = arith.constant 0 : i32
    %c0_i32_0 = arith.constant 0 : i32
    %c0_i32_1 = arith.constant 0 : i32
    return %c0_i32, %c0_i32_0 : i32, i32
  }
  func.func @transform_10(%arg0: i32) -> (i32, i32) {
    %c0_i32 = arith.constant 0 : i32
    %c0_i32_0 = arith.constant 0 : i32
    %c0_i32_1 = arith.constant 0 : i32
    return %c0_i32, %c0_i32_0 : i32, i32
  }
  func.func @transform_11(%arg0: i32) -> (i32, i32) {
    %c0_i32 = arith.constant 0 : i32
    %c0_i32_0 = arith.constant 0 : i32
    %c0_i32_1 = arith.constant 0 : i32
    return %c0_i32, %c0_i32_0 : i32, i32
  }
  func.func @transform_12(%arg0: i32) -> (i32, i32) {
    %c0_i32 = arith.constant 0 : i32
    %c0_i32_0 = arith.constant 0 : i32
    %c0_i32_1 = arith.constant 0 : i32
    return %c0_i32, %c0_i32_0 : i32, i32
  }
  func.func @transform_13(%arg0: i32) -> (i32, i32, i32) {
    %c0_i32 = arith.constant 0 : i32
    %c0_i32_0 = arith.constant 0 : i32
    %c0_i32_1 = arith.constant 0 : i32
    return %arg0, %c0_i32, %c0_i32_0 : i32, i32, i32
  }
}

</mosaic_0001>

<bundles_post_ra>
// kernel: transformer_forward.2
= control target key start
LH: loop header
LB: loop body
LE: loop exit
PB: predicated region body
PF: predicated region fallthrough
CT: control target
= control target key end

     0   :  { %s1273_s25 = smov 0   ;;  %s1424_s0 = inlined_call_operand.vmem [shape: f32[2,8,32], index: 0, kind: input, shape index: {}]   ;;  %s1425_s1 = inlined_call_operand.vmem [shape: f32[1,32], index: 1, kind: input, shape index: {}]   ;;  %s1426_s2 = inlined_call_operand.vmem [shape: f32[1,32], index: 2, kind: input, shape index: {}]   ;;  %s1427_s3 = inlined_call_operand.vmem [shape: bf16[32,96], index: 3, kind: input, shape index: {}]   ;;  %s1428_s4 = inlined_call_operand.vmem [shape: f32[1,96], index: 4, kind: input, shape index: {}]   ;;  %s1429_s5 = inlined_call_operand.vmem [shape: bf16[32,32], index: 5, kind: input, shape index: {}]   ;;  %s1430_s6 = inlined_call_operand.vmem [shape: f32[1,32], index: 6, kind: input, shape index: {}]   ;;  %s1431_s7 = inlined_call_operand.vmem [shape: f32[1,32], index: 7, kind: input, shape index: {}]   ;;  %s1432_s8 = inlined_call_operand.vmem [shape: f32[1,32], index: 8, kind: input, shape index: {}]   ;;  %s1433_s9 = inlined_call_operand.vmem [shape: bf16[32,128], index: 9, kind: input, shape index: {}]   ;;  %s1434_s10 = inlined_call_operand.vmem [shape: f32[1,128], index: 10, kind: input, shape index: {}]   ;;  %s1435_s11 = inlined_call_operand.vmem [shape: bf16[128,32], index: 11, kind: input, shape index: {}]   ;;  %s1436_s12 = inlined_call_operand.vmem [shape: f32[1,32], index: 12, kind: input, shape index: {}]   ;;  %s1437_s13 = inlined_call_operand.vmem [shape: f32[2,8,32], index: 13, kind: output, shape index: {}]  }
   0x1 LB: > { %s1032_s26 = sadd.s32 4294967295, %s1186_s25   ;;  %p1036_p0 = scmp.ge.s32.totalorder %s1186_s25, 1  ;;  %s1186_s25 = sphi %s1273_s25, %s23_s25  }
   0x2   : > { %p386_p1 = scmp.lt.s32.totalorder %s1186_s25, 3 }
   0x4   : > { %p387_p2 = pnand %p1036_p0, %p386_p1 }
   0x5   : > { %p428_p3 = scmp.lt.s32.totalorder (!%p387_p2), %s1032_s26, 1  ;;  %s1189_s24 = smov (!%p387_p2), 88  }
   0x6   : > { %390 = sbr.rel (%p387_p2) target bundleno = 2331 (0x91b), region = 72  ;;  %s1190_s28 = smov (!%p387_p2), 64  }
   0x7   : > { %s1191_s29 = smov (!%p387_p2), 96   ;;  %s1193_s14 = smov (!%p387_p2), 80  }
   0x8   : > { %s1194_s15 = smov (!%p387_p2), 120   ;;  %s1195_s16 = smov (!%p387_p2), 104  }
   0x9   : > { %s1196_s17 = smov (!%p387_p2), 112   ;;  %s1197_s18 = smov (!%p387_p2), 40  }
   0xa   : > { %s1198_s19 = smov (!%p387_p2), 48   ;;  %s1199_s20 = smov (!%p387_p2), 56  }
   0xb   : > { %s1439_s26 = smov (!%p428_p3, %s1032_s26), 1  ;;  %vm440_vm0 = vcmask 261120   ;;  %v1188_v2 = vmov 32.0   ;;  %v1110_v14 = vld [vmem:[%s1427_s3 + $0x8] sm:$0xff]  ;;  %v1109_v15 = vld [vmem:[%s1427_s3] sm:$0xff]  ;;  %vm558_vm5 = vcmask 1043456  }
   0xc   : > { %s1037_s27 = sshll.u32 %s1439_s26, 3  ;;  %1154 = vrcp.f32 %v1188_v2  ;;  %508 = vmatpush.bf16.msra.mxu0 %v1110_v14  ;;  %v1146_v25 = vld [vmem:[%s1425_s1] ss:$0 sm:$0xff]  ;;  %vm521_vm6 = vcmask 64512   ;;  %vm576_vm7 = vcmask 60416   ;;  %s1200_s21 = smov 16  }
   0xd   : > { %s431_s30 = scalar_lea.vmem %s1424_s0, %s1037_s27  ;;  %v1147_v28 = vld [vmem:[%s1426_s2] ss:$0 sm:$0xff]  ;;  %s1201_s22 = smov 8   ;;  %vm639_vm8 = vcmask 126016   ;;  %vm702_vm9 = vcmask 191616   ;;  %vm765_vm10 = vcmask 257216  }
   0xe   : > { %v1289_v0 = vld [vmem:[%s431_s30] sm:$0xff]  ;;  %s1192_s30 = smov 72   ;;  %s1202_s23 = smov 24  }
   0xf   : > { %v441_v1 = vsel %vm440_vm0, %v1289_v0, 0.0  ;;  %v1148_v32 = vld [vmem:[%s1428_s4] ss:$0 sm:$0xff] }
  0x10   : > { %442 = vadd.xlane.f32.xlu0 %v441_v1  ;;  %509 = vmatpush.bf16.msra.mxu0 %v1109_v15 }
  0x12   : > { %v1155_v3 = vpop.eup %1154 }
  0x13   : > { %v445_v4 = vmul.f32 32.0, %v1155_v3  ;;  %vm449_vm1 = vweird.f32 %v1155_v3 }
  0x15   : > { %v446_v5 = vsub.f32 1.0, %v445_v4 }
  0x17   : > { %v447_v6 = vmul.f32 %v1155_v3, %v446_v5 }
  0x19   : > { %v448_v7 = vadd.f32 %v1155_v3, %v447_v6 }
  0x1b   : > { %v1293_v8 = vsel %vm449_vm1, %v1155_v3, %v448_v7 }
  0x83   : > { %v443_v9 = vpop.xlane.xlu0 %442 }
  0x84   : > { %v451_v10 = vmul.f32 %v1293_v8, %v443_v9 }
  0x86   : > { %v452_v11 = vsub.f32 %v1289_v0, %v451_v10 }
  0x88   : > { %v453_v12 = vmul.f32 %v452_v11, %v452_v11 }
  0x8a   : > { %v454_v13 = vsel %vm440_vm0, %v453_v12, 0.0 }
  0x8b   : > { %455 = vadd.xlane.f32.xlu0 %v454_v13 }
  0xfe   : > { %v456_v16 = vpop.xlane.xlu0 %455 }
  0xff   : > { %v457_v17 = vmul.f32 %v456_v16, %v1293_v8 }
 0x101   : > { %v458_v18 = vadd.f32 1e-05, %v457_v17 }
 0x103   : > { %1156 = vrsqrt.f32 %v458_v18  ;;  %vm465_vm3 = vweird.f32 %v458_v18 }
 0x109   : > { %v1157_v19 = vpop.eup %1156 }
 0x10a   : > { %v460_v20 = vmul.f32 %v1157_v19, %v458_v18  ;;  %vm466_vm2 = vweird.f32 %v1157_v19 }
 0x10b   : > { %vm467_vm4 = vmor %vm465_vm3, %vm466_vm2 }
 0x10c   : > { %v461_v21 = vmul.f32 %v1157_v19, %v460_v20 }
 0x10e   : > { %v462_v22 = vmul.f32 0.5, %v461_v21 }
 0x110   : > { %v463_v23 = vsub.f32 1.5, %v462_v22 }
 0x112   : > { %v464_v24 = vmul.f32 %v1157_v19, %v463_v23 }
 0x114   : > { %v468_v26 = vsel %vm467_vm4, %v1157_v19, %v464_v24 }
 0x115   : > { %v469_v27 = vmul.f32 %v468_v26, %v452_v11 }
 0x117   : > { %v473_v29 = vmul.f32 %v1146_v25, %v469_v27 }
 0x119   : > { %v477_v30 = vadd.f32 %v1147_v28, %v473_v29 }
 0x11b   : > { %v478_v31 = vpack.c.bf16 %v477_v30, %v477_v30 }
 0x11d   : > { %1047 = vmatmul.msk.bf16.vlgmr.msra.gmra.mxu0 %vm440_vm0, %v478_v31 }
 0x19a   : > { %v511_v33 = vpop.f32.mrf.mxu0 }
 0x19b   : > { %v512_v34 = vadd.f32 %v1148_v32, %v511_v33 }
 0x19d   : > { %v515_v35 = vpack.c.bf16 %v512_v34, %v512_v34 }
 0x19f   : > { %v517_v36 = vunpack.c.l.b16 %v515_v35 }
 0x1a1   : > { %v1315_v37 = vpack.c.b16 %v517_v36, %v517_v36 }
 0x1a2   : > { %v513_v38 = vpop.f32.mrf.mxu0 }
 0x1a3   : > { %580 = vrot.lane.b32.xlu0 %v1315_v37, %s1189_s24  ;;  %553 = vrot.lane.b32.xlu2 %v1315_v37, %s1190_s28 }
 0x1a4   : > { %519 = vrot.lane.b32.xlu1 %v1315_v37, %s1191_s29 }
 0x1ab   : > { %706 = vrot.lane.b32.xlu0 %v1315_v37, %s1192_s30 }
 0x1b3   : > { %643 = vrot.lane.b32.xlu0 %v1315_v37, %s1193_s14 }
 0x1fd   : > { %v554_v39 = vpop.permute.xlu2 %553 }
 0x1fe   : > { %v560_v40 = vsel %vm558_vm5, %v554_v39, 0 }
 0x1ff   : > { %569 = vmatpush.bf16.msra.mxu2 %v560_v40 }
 0x215   : > { %v581_v41 = vpop.permute.xlu0 %580 }
 0x216   : > { %v520_v42 = vpop.permute.xlu1 %519  ;;  %v586_v43 = vsel %vm521_vm6, %v581_v41, 0 }
 0x217   : > { %v526_v44 = vsel %vm521_vm6, %v520_v42, 0  ;;  %595 = vmatpush.bf16.xpose.msrb.mxu2 %v586_v43 }
 0x218   : > { %535 = vmatpush.bf16.xpose.msra.mxu1 %v526_v44 }
 0x21d   : > { %v707_v45 = vpop.permute.xlu0 %706 }
 0x21e   : > { %v712_v46 = vsel %vm521_vm6, %v707_v45, 0 }
 0x21f   : > { %1048 = vmatmul.msk.bf16.vlgmr.msra.gmra.mxu1 %vm521_vm6, %v515_v35  ;;  %721 = vmatpush.bf16.xpose.msra.mxu3 %v712_v46 }
 0x225   : > { %v644_v47 = vpop.permute.xlu0 %643 }
 0x226   : > { %v649_v48 = vsel %vm521_vm6, %v644_v47, 0 }
 0x227   : > { %658 = vmatpush.bf16.xpose.msrb.mxu0 %v649_v48 }
 0x29c   : > { %v537_v49 = vpop.f32.mrf.mxu1 }
 0x29d   : > { %v541_v50 = vsel %vm521_vm6, %v537_v49, -inf }
 0x29e   : > { %542 = vmax.xlane.f32.xlu1 %v541_v50 }
 0x2a4   : > { %v539_v51 = vpop.f32.mrf.mxu1 }
 0x311   : > { %v543_v52 = vpop.xlane.xlu1 %542 }
 0x312   : > { %v544_v53 = vsub.f32 %v537_v49, %v543_v52 }
 0x314   : > { %v545_v54 = vmul.f32 1.442695, %v544_v53 }
 0x316   : > { %1158 = vpow2.f32 %v545_v54 }
 0x31c   : > { %v1159_v55 = vpop.eup %1158 }
 0x31d   : > { %v547_v56 = vsel %vm521_vm6, %v1159_v55, 0.0 }
 0x31e   : > { %548 = vadd.xlane.f32.xlu2 %v547_v56  ;;  %v1112_v56 = vld [vmem:[%s1429_s5 + $0x8] sm:$0xff] }
 0x31f   : > { %797 = vmatpush.bf16.msra.mxu0 %v1112_v56 }
 0x336   : > { %578 = vrot.lane.b32.xlu2 %v1315_v37, %s1194_s15 }
 0x33e   : > { %704 = vrot.lane.b32.xlu2 %v1315_v37, %s1195_s16 }
 0x346   : > { %641 = vrot.lane.b32.xlu2 %v1315_v37, %s1196_s17 }
 0x391   : > { %v549_v57 = vpop.xlane.xlu2 %548 }
 0x392   : > { %1160 = vrcp.f32 %v549_v57 }
 0x398   : > { %v1161_v58 = vpop.eup %1160 }
 0x399   : > { %v579_v59 = vpop.permute.xlu2 %578  ;;  %v551_v60 = vmul.f32 %v1161_v58, %v1159_v55 }
 0x39b   : > { %v552_v61 = vpack.c.bf16 %v551_v60, %v551_v60 }
 0x39d   : > { %1049 = vmatmul.msk.bf16.vlgmr.msra.gmra.mxu2 %vm521_vm6, %v552_v61 }
 0x3a1   : > { %v705_v62 = vpop.permute.xlu2 %704 }
 0x3a2   : > { %1054 = vmatmul.msk.bf16.vlgmr.msra.gmra.mxu3 %vm521_vm6, %v705_v62  ;;  %v1149_v62 = vld [vmem:[%s1430_s6] ss:$0 sm:$0xff] }
 0x3a9   : > { %v642_v63 = vpop.permute.xlu2 %641 }
 0x3aa   : > { %1052 = vmatmul.msk.bf16.vlgmr.msrb.gmra.mxu0 %vm521_vm6, %v642_v63 }
 0x3ad   : > { %1050 = vmatmul.msk.bf16.vlgmr.msrb.gmra.mxu2 %vm521_vm6, %v579_v59  ;;  %v1111_v59 = vld [vmem:[%s1429_s5] sm:$0xff] }
 0x3ae   : > { %798 = vmatpush.bf16.msra.mxu0 %v1111_v59 }
 0x420   : > { %v571_v1 = vpop.f32.mrf.mxu2 }
 0x421   : > { %v575_v2 = vpack.c.bf16 %v571_v1, %v571_v1 }
 0x423   : > { %577 = vst.msk [vmem:[#allocation2] sm:$0xf] %vm576_vm7, %v575_v2 }
 0x425   : > { %v723_v3 = vpop.f32.mrf.mxu3 }
 0x426   : > { %v727_v4 = vsel %vm521_vm6, %v723_v3, -inf }
 0x427   : > { %728 = vmax.xlane.f32.xlu0 %v727_v4  ;;  %v660_v5 = vpop.f32.mrf.mxu0 }
 0x428   : > { %v573_v6 = vpop.f32.mrf.mxu2  ;;  %v664_v7 = vsel %vm521_vm6, %v660_v5, -inf }
 0x429   : > { %665 = vmax.xlane.f32.xlu2 %v664_v7 }
 0x42d   : > { %v725_v9 = vpop.f32.mrf.mxu3 }
 0x42f   : > { %v662_v10 = vpop.f32.mrf.mxu0 }
 0x430   : > { %v597_v11 = vpop.f32.mrf.mxu2 }
 0x431   : > { %v601_v12 = vsel %vm521_vm6, %v597_v11, -inf }
 0x432   : > { %602 = vmax.xlane.f32.xlu1 %v601_v12 }
 0x438   : > { %v599_v13 = vpop.f32.mrf.mxu2 }
 0x441   : > { %739 = vrot.lane.b32.xlu2 %v1315_v37, %s1197_s18  ;;  %s435_s18 = scalar_lea.vmem %s1437_s13, %s1037_s27 }
 0x49a   : > { %v729_v24 = vpop.xlane.xlu0 %728 }
 0x49b   : > { %v730_v25 = vsub.f32 %v723_v3, %v729_v24 }
 0x49c   : > { %v666_v14 = vpop.xlane.xlu2 %665 }
 0x49d   : > { %v667_v15 = vsub.f32 %v660_v5, %v666_v14  ;;  %v731_v26 = vmul.f32 1.442695, %v730_v25 }
 0x49f   : > { %v668_v16 = vmul.f32 1.442695, %v667_v15 }
 0x4a1   : > { %1162 = vpow2.f32 %v668_v16 }
 0x4a5   : > { %v603_v17 = vpop.xlane.xlu1 %602 }
 0x4a6   : > { %v604_v18 = vsub.f32 %v597_v11, %v603_v17  ;;  %v1114_v11 = vld [vmem:[%s1433_s9 + $0x8] sm:$0xff] }
 0x4a7   : > { %v1163_v19 = vpop.eup %1162 }
 0x4a8   : > { %v605_v20 = vmul.f32 1.442695, %v604_v18  ;;  %v670_v21 = vsel %vm521_vm6, %v1163_v19, 0.0 }
 0x4a9   : > { %671 = vadd.xlane.f32.xlu0 %v670_v21  ;;  %v1150_v21 = vld [vmem:[%s1431_s7] ss:$0 sm:$0xff] }
 0x4aa   : > { %1164 = vpow2.f32 %v605_v20 }
 0x4ab   : > { %1166 = vpow2.f32 %v731_v26 }
 0x4b0   : > { %v1165_v22 = vpop.eup %1164 }
 0x4b1   : > { %v607_v23 = vsel %vm521_vm6, %v1165_v22, 0.0  ;;  %v1167_v27 = vpop.eup %1166 }
 0x4b2   : > { %608 = vadd.xlane.f32.xlu1 %v607_v23  ;;  %v733_v28 = vsel %vm521_vm6, %v1167_v27, 0.0 }
 0x4bd   : > { %676 = vrot.lane.b32.xlu0 %v1315_v37, %s1198_s19 }
 0x4cb   : > { %613 = vrot.lane.b32.xlu1 %v1315_v37, %s1199_s20  ;;  %v740_v37 = vpop.permute.xlu2 %739 }
 0x4cc   : > { %v745_v41 = vsel %vm558_vm5, %v740_v37, 0 }
 0x4f5   : > { %734 = vadd.xlane.f32.xlu1 %v733_v28  ;;  %v1121_v28 = vld [vmem:[%s1435_s11 + $0x30] sm:$0xff] }
 0x51c   : > { %v672_v29 = vpop.xlane.xlu0 %671 }
 0x51d   : > { %1168 = vrcp.f32 %v672_v29  ;;  %v1120_v29 = vld [vmem:[%s1435_s11 + $0x28] sm:$0xff] }
 0x523   : > { %v1169_v30 = vpop.eup %1168 }
 0x524   : > { %v674_v31 = vmul.f32 %v1169_v30, %v1163_v19  ;;  %v1119_v30 = vld [vmem:[%s1435_s11 + $0x20] sm:$0xff] }
 0x525   : > { %v609_v33 = vpop.xlane.xlu1 %608 }
 0x526   : > { %v675_v35 = vpack.c.bf16 %v674_v31, %v674_v31  ;;  %1170 = vrcp.f32 %v609_v33  ;;  %v1118_v31 = vld [vmem:[%s1435_s11 + $0x18] sm:$0xff]  ;;  %v1116_v33 = vld [vmem:[%s1435_s11 + $0x8] sm:$0xff] }
 0x52c   : > { %v1171_v36 = vpop.eup %1170 }
 0x52d   : > { %v611_v38 = vmul.f32 %v1171_v36, %v1165_v22  ;;  %v1115_v36 = vld [vmem:[%s1435_s11] sm:$0xff] }
 0x52f   : > { %v677_v32 = vpop.permute.xlu0 %676  ;;  %v612_v42 = vpack.c.bf16 %v611_v38, %v611_v38 }
 0x530   : > { %v682_v34 = vsel %vm558_vm5, %v677_v32, 0  ;;  %v1117_v32 = vld [vmem:[%s1435_s11 + $0x10] sm:$0xff] }
 0x531   : > { %691 = vmatpush.bf16.msrb.mxu1 %v682_v34  ;;  %v1152_v34 = vld [vmem:[%s1434_s10] ss:$0 sm:$0xff] }
 0x534   : > { %1053 = vmatmul.msk.bf16.vlgmr.msrb.gmra.mxu1 %vm521_vm6, %v675_v35 }
 0x535   : > { %867 = vmatpush.bf16.msra.mxu1 %v1114_v11 }
 0x53d   : > { %v614_v39 = vpop.permute.xlu1 %613 }
 0x53e   : > { %v619_v40 = vsel %vm558_vm5, %v614_v39, 0 }
 0x53f   : > { %628 = vmatpush.bf16.msra.mxu2 %v619_v40 }
 0x542   : > { %1051 = vmatmul.msk.bf16.vlgmr.msra.gmra.mxu2 %vm521_vm6, %v612_v42 }
 0x543   : > { %754 = vmatpush.bf16.msrb.mxu2 %v745_v41 }
 0x568   : > { %v735_v43 = vpop.xlane.xlu1 %734 }
 0x569   : > { %1172 = vrcp.f32 %v735_v43 }
 0x56f   : > { %v1173_v44 = vpop.eup %1172 }
 0x570   : > { %v737_v45 = vmul.f32 %v1173_v44, %v1167_v27  ;;  %v1122_v27 = vld [vmem:[%s1435_s11 + $0x38] sm:$0xff] }
 0x571   : > { %964 = vmatpush.bf16.msrb.mxu3 %v1122_v27 }
 0x572   : > { %v738_v46 = vpack.c.bf16 %v737_v45, %v737_v45 }
 0x574   : > { %1055 = vmatmul.msk.bf16.vlgmr.msrb.gmra.mxu2 %vm521_vm6, %v738_v46 }
 0x575   : > { %965 = vmatpush.bf16.msrb.mxu3 %v1121_v28 }
 0x579   : > { %966 = vmatpush.bf16.msrb.mxu3 %v1120_v29 }
 0x57d   : > { %967 = vmatpush.bf16.msrb.mxu3 %v1119_v30 }
 0x581   : > { %968 = vmatpush.bf16.msrb.mxu3 %v1118_v31 }
 0x585   : > { %969 = vmatpush.bf16.msrb.mxu3 %v1117_v32 }
 0x589   : > { %970 = vmatpush.bf16.msrb.mxu3 %v1116_v33 }
 0x58d   : > { %971 = vmatpush.bf16.msrb.mxu3 %v1115_v36 }
 0x5b1   : > { %v693_v47 = vpop.f32.mrf.mxu1 }
 0x5b2   : > { %v697_v48 = vpack.c.bf16 %v693_v47, %v693_v47 }
 0x5b4   : > { %699 = vrot.lane.b32.xlu0 %v697_v48, %s1200_s21 }
 0x5b9   : > { %v695_v49 = vpop.f32.mrf.mxu1 }
 0x5c5   : > { %v630_v50 = vpop.f32.mrf.mxu2 }
 0x5c6   : > { %v634_v51 = vpack.c.bf16 %v630_v50, %v630_v50 }
 0x5c8   : > { %636 = vrot.lane.b32.xlu2 %v634_v51, %s1201_s22 }
 0x5cd   : > { %v632_v52 = vpop.f32.mrf.mxu2 }
 0x5f7   : > { %v756_v53 = vpop.f32.mrf.mxu2 }
 0x5f8   : > { %v760_v54 = vpack.c.bf16 %v756_v53, %v756_v53 }
 0x5fa   : > { %762 = vrot.lane.b32.xlu2 %v760_v54, %s1202_s23 }
 0x5ff   : > { %v758_v55 = vpop.f32.mrf.mxu2 }
 0x600   : > { %v1153_v55 = vld [vmem:[%s1436_s12] ss:$0 sm:$0xff] }
 0x622   : > { %v637_v57 = vpop.permute.xlu2 %636 }
 0x623   : > { %640 = vst.msk [vmem:[#allocation2] sm:$0xf] %vm639_vm8, %v637_v57 }
 0x626   : > { %v700_v58 = vpop.permute.xlu0 %699 }
 0x627   : > { %703 = vst.msk [vmem:[#allocation2] sm:$0xf] %vm702_vm9, %v700_v58 }
 0x654   : > { %v763_v60 = vpop.permute.xlu2 %762 }
 0x655   : > { %766 = vst.msk [vmem:[#allocation2] sm:$0xf] %vm765_vm10, %v763_v60 }
 0x65c   : > { %v767_v61 = vld [vmem:[#allocation2] sm:$0xf] }
 0x65d   : > { %1064 = vmatmul.msk.bf16.vlgmr.msra.gmra.mxu0 %vm440_vm0, %v767_v61 }
 0x6da   : > { %v800_v63 = vpop.f32.mrf.mxu0 }
 0x6db   : > { %v801_v1 = vadd.f32 %v1149_v62, %v800_v63 }
 0x6dd   : > { %v1363_v2 = vadd.f32 %v801_v1, %v1289_v0  ;;  %v1113_v0 = vld [vmem:[%s1433_s9] sm:$0xff] }
 0x6de   : > { %868 = vmatpush.bf16.msra.mxu1 %v1113_v0 }
 0x6df   : > { %v807_v3 = vsel %vm440_vm0, %v1363_v2, 0.0 }
 0x6e0   : > { %808 = vadd.xlane.f32.xlu0 %v807_v3 }
 0x6e2   : > { %v802_v4 = vpop.f32.mrf.mxu0 }
 0x753   : > { %v809_v5 = vpop.xlane.xlu0 %808 }
 0x754   : > { %v810_v6 = vmul.f32 %v809_v5, %v1293_v8 }
 0x756   : > { %v811_v7 = vsub.f32 %v1363_v2, %v810_v6 }
 0x758   : > { %v812_v9 = vmul.f32 %v811_v7, %v811_v7 }
 0x75a   : > { %v813_v10 = vsel %vm440_vm0, %v812_v9, 0.0 }
 0x75b   : > { %814 = vadd.xlane.f32.xlu1 %v813_v10 }
 0x7ce   : > { %v815_v12 = vpop.xlane.xlu1 %814 }
 0x7cf   : > { %v816_v13 = vmul.f32 %v815_v12, %v1293_v8  ;;  %v1151_v8 = vld [vmem:[%s1432_s8] ss:$0 sm:$0xff] }
 0x7d1   : > { %v817_v14 = vadd.f32 1e-05, %v816_v13 }
 0x7d3   : > { %1174 = vrsqrt.f32 %v817_v14  ;;  %vm824_vm12 = vweird.f32 %v817_v14 }
 0x7d9   : > { %v1175_v15 = vpop.eup %1174 }
 0x7da   : > { %v819_v16 = vmul.f32 %v1175_v15, %v817_v14  ;;  %vm825_vm11 = vweird.f32 %v1175_v15 }
 0x7db   : > { %vm826_vm13 = vmor %vm824_vm12, %vm825_vm11 }
 0x7dc   : > { %v820_v17 = vmul.f32 %v1175_v15, %v819_v16 }
 0x7de   : > { %v821_v18 = vmul.f32 0.5, %v820_v17 }
 0x7e0   : > { %v822_v19 = vsub.f32 1.5, %v821_v18 }
 0x7e2   : > { %v823_v20 = vmul.f32 %v1175_v15, %v822_v19 }
 0x7e4   : > { %v827_v22 = vsel %vm826_vm13, %v1175_v15, %v823_v20 }
 0x7e5   : > { %v828_v23 = vmul.f32 %v827_v22, %v811_v7 }
 0x7e7   : > { %v832_v24 = vmul.f32 %v1150_v21, %v828_v23 }
 0x7e9   : > { %v836_v25 = vadd.f32 %v1151_v8, %v832_v24 }
 0x7eb   : > { %v837_v26 = vpack.c.bf16 %v836_v25, %v836_v25 }
 0x7ed   : > { %1073 = vmatmul.msk.bf16.vlgmr.msra.gmra.mxu1 %vm440_vm0, %v837_v26 }
 0x86a   : > { %v870_v35 = vpop.f32.mrf.mxu1 }
 0x86b   : > { %v871_v37 = vadd.f32 %v1152_v34, %v870_v35 }
 0x86d   : > { %v1074_v38 = vmul.f32 -1.702, %v871_v37 }
 0x86f   : > { %v876_v39 = vmul.f32 1.442695, %v1074_v38 }
 0x871   : > { %1176 = vpow2.f32 %v876_v39 }
 0x872   : > { %v872_v40 = vpop.f32.mrf.mxu1 }
 0x877   : > { %v1177_v41 = vpop.eup %1176 }
 0x878   : > { %v878_v42 = vadd.f32 1.0, %v1177_v41 }
 0x87a   : > { %1178 = vrcp.f32 %v878_v42  ;;  %v890_v46 = vand.u32 2147483648, %v878_v42  ;;  %v888_v48 = vand.u32 2147483647, %v878_v42  ;;  %vm884_vm15 = vweird.f32 %v878_v42 }
 0x87c   : > { %v891_v50 = vor.u32 1.1754944e-38, %v890_v46  ;;  %vm889_vm2 = vcmp.eq.f32.partialorder %v888_v48, 8.507059e+37 }
 0x880   : > { %v1179_v43 = vpop.eup %1178 }
 0x881   : > { %v880_v44 = vmul.f32 %v1179_v43, %v878_v42  ;;  %vm885_vm14 = vweird.f32 %v1179_v43 }
 0x882   : > { %vm886_vm1 = vmor %vm884_vm15, %vm885_vm14 }
 0x883   : > { %v881_v45 = vsub.f32 1.0, %v880_v44 }
 0x885   : > { %v882_v47 = vmul.f32 %v1179_v43, %v881_v45 }
 0x887   : > { %v883_v49 = vadd.f32 %v1179_v43, %v882_v47 }
 0x889   : > { %v887_v51 = vsel %vm886_vm1, %v1179_v43, %v883_v49 }
 0x88a   : > { %v892_v52 = vsel %vm889_vm2, %v891_v50, %v887_v51 }
 0x88b   : > { %v894_v53 = vmul.f32 %v892_v52, %v871_v37 }
 0x88d   : > { %v895_v54 = vpack.c.bf16 %v894_v53, %v894_v53 }
 0x88f   : > { %972 = vmatmul.bf16.vlgmr.msrb.gmra.mxu3 %v895_v54 }
 0x912   : > { %v973_v56 = vpop.f32.mrf.mxu3 }
 0x913   : > { %v974_v57 = vadd.f32 %v1153_v55, %v973_v56 }
 0x915   : > { %v977_v58 = vadd.f32 %v974_v57, %v1363_v2 }
 0x917   : > { %978 = vst.msk [vmem:[%s435_s18] sm:$0xff] %vm440_vm0, %v977_v58 }
 0x91a   : > { %v975_v59 = vpop.f32.mrf.mxu3 }
 0x91b PF: > { %s23_s25 = sadd.s32 1, %s1186_s25  }
 0x91c   : > { %p20_p4 = scmp.ge.s32.totalorder %s23_s25, 4  }
 0x91e   :  { %22 = sbr.rel (!%p20_p4) target bundleno = 1 (0x1), region = 102 }

</bundles_post_ra>
